<compile_context>
chip_gen: v7x
topology: tpu7x:2x2x1
jax: 0.10.0
libtpu: 0.0.40
codegen_flags: <defaults>
</compile_context>

<pallas_src>
import math
from functools import partial

import jax
import jax.numpy as jnp
from jax.experimental import pallas as pl
from jax.experimental.pallas import tpu as pltpu


def _timestep_embedder_kernel(t_ref, w1_ref, b1_ref, w2_ref, b2_ref, o_ref, *,
                              freq_dim, max_period):
    # t_ref: (tile_n, 1); w1: (F, Hp); b1: (1, Hp); w2: (Hp, Hc); b2: (1, Hc)
    # o_ref: (tile_n, Hc)
    half = freq_dim // 2
    t = t_ref[...].astype(jnp.float32)                        # (tile_n, 1)

    # Sinusoidal embedding from an in-register iota, single cosine per lane:
    #   lane i <  half -> cos(t * freqs[i])
    #   lane i >= half -> sin(t * freqs[i-half]) == cos(t * freqs[i-half] - pi/2)
    idx = jax.lax.broadcasted_iota(jnp.int32, (1, freq_dim), 1)
    first = idx < half
    k = jnp.where(first, idx, idx - half).astype(jnp.float32)
    freqs = jnp.exp((-math.log(max_period) / half) * k)       # (1, F)
    phase = jnp.where(first, 0.0, 0.5 * math.pi).astype(jnp.float32)
    emb = jnp.cos(t * freqs - phase)                          # (tile_n, F)
    if freq_dim % 2:                                          # odd dim -> zero last lane
        emb = jnp.where(idx < 2 * half, emb, 0.0)

    # Linear -> SiLU -> Linear.  Matmul inputs in the weight dtype (pass bf16
    # weights for the bf16 MXU and half the weight DMA); accumulation in f32.
    h = jnp.dot(emb.astype(w1_ref.dtype), w1_ref[...],
                preferred_element_type=jnp.float32)
    h = h + b1_ref[...].astype(jnp.float32)
    # SiLU in the matmul dtype: with bf16 weights the sigmoid uses the bf16 EUP
    # path (v6e/v7x) and the product feeds the bf16 MXU directly.
    hb = h.astype(w2_ref.dtype)
    act = hb * jax.nn.sigmoid(hb)
    y = jnp.dot(act, w2_ref[...], preferred_element_type=jnp.float32)
    y = y + b2_ref[...].astype(jnp.float32)
    o_ref[...] = y.astype(o_ref.dtype)


def timestep_embedder(t, w1, b1, w2, b2, *, max_period=10000.0,
                      tile_n=256, col_splits=1, out_dtype=None):
    """t: (N,).  w1: (F, H), b1: (H,), w2: (H, H), b2: (H,).

    Weights are pre-transposed from PyTorch nn.Linear's (out, in) layout so the
    kernel computes x @ W.  Pass bf16 weights for the bf16 MXU / half the
    weight DMA (output dtype then also bf16 unless out_dtype overrides).
    col_splits=2 column-splits the second Linear across a second "parallel"
    grid axis (useful on v7x's two TensorCores when N is small).
    """
    N = t.shape[0]
    F, H = w1.shape
    assert w2.shape == (H, H) and b1.shape == (H,) and b2.shape == (H,)
    if out_dtype is None:
        out_dtype = w2.dtype

    # Lane-dense output: pad the hidden dim to a multiple of 128 (zero padding
    # keeps the math exact; extra columns are sliced off below).
    Hp = max(128, pl.cdiv(H, 128) * 128)
    if Hp != H:
        w1 = jnp.pad(w1, ((0, 0), (0, Hp - H)))
        b1 = jnp.pad(b1, ((0, Hp - H),))
        w2 = jnp.pad(w2, ((0, Hp - H), (0, Hp - H)))
        b2 = jnp.pad(b2, ((0, Hp - H),))

    # Column-split of the second Linear / output across grid axis j.
    if col_splits < 1 or Hp % (col_splits * 128) != 0:
        col_splits = 1
    Hc = Hp // col_splits

    # Tile the timestep axis in multiples of 8 sublanes; pad N up.
    tile_n = max(8, min(tile_n, pl.cdiv(N, 8) * 8))
    n_pad = pl.cdiv(N, tile_n) * tile_n
    t2 = t.reshape(N, 1).astype(jnp.float32)
    if n_pad != N:
        t2 = jnp.pad(t2, ((0, n_pad - N), (0, 0)))
    b1_2 = b1.reshape(1, Hp)
    b2_2 = b2.reshape(1, Hp)

    grid_spec = pltpu.PrefetchScalarGridSpec(
        num_scalar_prefetch=0,
        grid=(n_pad // tile_n, col_splits),
        in_specs=[
            pl.BlockSpec((tile_n, 1), lambda i, j: (i, 0)),   # t tile
            pl.BlockSpec((F, Hp), lambda i, j: (0, 0)),       # w1 (grid-invariant)
            pl.BlockSpec((1, Hp), lambda i, j: (0, 0)),       # b1
            pl.BlockSpec((Hp, Hc), lambda i, j: (0, j)),      # w2 column block
            pl.BlockSpec((1, Hc), lambda i, j: (0, j)),       # b2 column block
        ],
        out_specs=pl.BlockSpec((tile_n, Hc), lambda i, j: (i, j)),
    )

    # Advisory cost hint: tiny, weight-DMA-bound kernel -> let XLA overlap it.
    elt_w = jnp.dtype(w1.dtype).itemsize
    elt_o = jnp.dtype(out_dtype).itemsize
    cost = pl.CostEstimate(
        flops=2 * n_pad * Hp * (F + Hp),
        transcendentals=n_pad * (F + Hp),
        bytes_accessed=int((F * Hp + Hp * Hp + 2 * Hp) * elt_w
                           + n_pad * (4 + Hp * elt_o)),
    )

    # Bump the scoped-VMEM limit only when the working set actually needs it.
    weight_bytes = (F * Hp + Hp) * elt_w + (Hp * Hc + Hc) * jnp.dtype(w2.dtype).itemsize
    io_bytes = tile_n * (4 + Hc * elt_o)
    vmem_est = 2 * (weight_bytes + io_bytes)
    compiler_kwargs = dict(dimension_semantics=("parallel", "parallel"))
    if vmem_est > 24 * 1024 * 1024:
        compiler_kwargs["vmem_limit_bytes"] = int(
            min(120 * 1024 * 1024, vmem_est + (16 << 20)))

    out = pl.pallas_call(
        partial(_timestep_embedder_kernel, freq_dim=F, max_period=max_period),
        out_shape=jax.ShapeDtypeStruct((n_pad, Hp), out_dtype),
        grid_spec=grid_spec,
        compiler_params=pltpu.CompilerParams(**compiler_kwargs),
        cost_estimate=cost,
    )(t2, w1, b1_2, w2, b2_2)
    return out[:N, :H]


def timestep_embedder_ref(t, w1, b1, w2, b2, freq_dim=256, max_period=10000.0):
    # Pure-JAX reference matching the PyTorch module.
    half = freq_dim // 2
    freqs = jnp.exp(-math.log(max_period) *
                    jnp.arange(half, dtype=jnp.float32) / half)
    args = t[:, None].astype(jnp.float32) * freqs[None]
    emb = jnp.concatenate([jnp.cos(args), jnp.sin(args)], axis=-1)
    if freq_dim % 2:
        emb = jnp.concatenate([emb, jnp.zeros_like(emb[:, :1])], axis=-1)
    h = emb @ w1 + b1
    h = h * jax.nn.sigmoid(h)
    return h @ w2 + b2


if __name__ == "__main__":
    key = jax.random.PRNGKey(0)
    kt, k1, k2, k3, k4 = jax.random.split(key, 5)

    # ---- Test 1: module-consistent small shapes, f32 params (tight check). ----
    N, H, F = 2, 32, 256
    t = jax.random.uniform(kt, (N,), dtype=jnp.float32, minval=0.0, maxval=1000.0)
    w1 = jax.random.normal(k1, (F, H), dtype=jnp.float32) * 0.02
    b1 = jax.random.normal(k2, (H,), dtype=jnp.float32) * 0.02
    w2 = jax.random.normal(k3, (H, H), dtype=jnp.float32) * 0.02
    b2 = jax.random.normal(k4, (H,), dtype=jnp.float32) * 0.02

    out = jax.block_until_ready(timestep_embedder(t, w1, b1, w2, b2))
    ref = timestep_embedder_ref(t, w1, b1, w2, b2, freq_dim=F)
    assert out.shape == (N, H)
    err = float(jnp.max(jnp.abs(out.astype(jnp.float32) - ref)))
    assert err < 2e-3, err

    # ---- Test 2: bf16 params + column-split second Linear (v7x 2-TC path). ----
    N2, H2 = 8, 256
    t_b = jax.random.uniform(kt, (N2,), dtype=jnp.float32, minval=0.0, maxval=1000.0)
    w1b = (jax.random.normal(k1, (F, H2), dtype=jnp.float32) * 0.02).astype(jnp.bfloat16)
    b1b = (jax.random.normal(k2, (H2,), dtype=jnp.float32) * 0.02).astype(jnp.bfloat16)
    w2b = (jax.random.normal(k3, (H2, H2), dtype=jnp.float32) * 0.02).astype(jnp.bfloat16)
    b2b = (jax.random.normal(k4, (H2,), dtype=jnp.float32) * 0.02).astype(jnp.bfloat16)

    out2 = jax.block_until_ready(
        timestep_embedder(t_b, w1b, b1b, w2b, b2b, col_splits=2))
    ref2 = timestep_embedder_ref(
        t_b, w1b.astype(jnp.float32), b1b.astype(jnp.float32),
        w2b.astype(jnp.float32), b2b.astype(jnp.float32), freq_dim=F)
    assert out2.shape == (N2, H2)
    err2 = float(jnp.max(jnp.abs(out2.astype(jnp.float32) - ref2)))
    assert err2 < 3e-2, err2

    print("KERNEL_OK")
</pallas_src>

<mosaic_0001>
module attributes {stable_mosaic.version = 11 : i64} {
  func.func @_timestep_embedder_kernel(%arg0: i32, %arg1: i32, %arg2: memref<8x1xf32, #tpu.memory_space<vmem>>, %arg3: memref<256x128xf32, #tpu.memory_space<vmem>>, %arg4: memref<1x128xf32, #tpu.memory_space<vmem>>, %arg5: memref<128x128xf32, #tpu.memory_space<vmem>>, %arg6: memref<1x128xf32, #tpu.memory_space<vmem>>, %arg7: memref<8x128xf32, #tpu.memory_space<vmem>>) attributes {dimension_semantics = [#tpu.dimension_semantics<parallel>, #tpu.dimension_semantics<parallel>], iteration_bounds = array<i64: 1, 1>, scalar_prefetch = 0 : i64, scratch_operands = 0 : i64, tpu.core_type = #tpu.core_type<tc>, window_params = [{transform_indices = @transform_0, window_bounds = array<i64: 8, 1>}, {pipeline_mode = #tpu.pipeline_mode<synchronous>, transform_indices = @transform_1, window_bounds = array<i64: 256, 128>}, {pipeline_mode = #tpu.pipeline_mode<synchronous>, transform_indices = @transform_2, window_bounds = array<i64: 1, 128>}, {transform_indices = @transform_3, window_bounds = array<i64: 128, 128>}, {transform_indices = @transform_4, window_bounds = array<i64: 1, 128>}, {transform_indices = @transform_5, window_bounds = array<i64: 8, 128>}]} {
    %c0 = arith.constant 0 : index
    %c0_0 = arith.constant 0 : index
    %0 = vector.load %arg2[%c0, %c0_0] : memref<8x1xf32, #tpu.memory_space<vmem>>, vector<8x1xf32>
    %1 = tpu.iota {dimensions = array<i32: 1>} : vector<1x256xi32>
    %c128_i32 = arith.constant 128 : i32
    %2 = vector.broadcast %c128_i32 : i32 to vector<1x256xi32>
    %3 = arith.cmpi slt, %1, %2 : vector<1x256xi32>
    %c128_i32_1 = arith.constant 128 : i32
    %4 = vector.broadcast %c128_i32_1 : i32 to vector<1x256xi32>
    %5 = arith.subi %1, %4 : vector<1x256xi32>
    %6 = arith.select %3, %1, %5 : vector<1x256xi1>, vector<1x256xi32>
    %7 = arith.sitofp %6 : vector<1x256xi32> to vector<1x256xf32>
    %cst = arith.constant -0.0719557852 : f32
    %8 = vector.broadcast %cst : f32 to vector<1x256xf32>
    %9 = arith.mulf %8, %7 : vector<1x256xf32>
    %10 = math.exp %9 : vector<1x256xf32>
    %cst_2 = arith.constant 0.000000e+00 : f32
    %cst_3 = arith.constant 1.57079637 : f32
    %11 = vector.broadcast %cst_2 : f32 to vector<1x256xf32>
    %12 = vector.broadcast %cst_3 : f32 to vector<1x256xf32>
    %13 = arith.select %3, %11, %12 : vector<1x256xi1>, vector<1x256xf32>
    %14 = vector.broadcast %0 : vector<8x1xf32> to vector<8x256xf32>
    %15 = vector.broadcast %10 : vector<1x256xf32> to vector<8x256xf32>
    %16 = arith.mulf %14, %15 : vector<8x256xf32>
    %17 = vector.broadcast %13 : vector<1x256xf32> to vector<8x256xf32>
    %18 = arith.subf %16, %17 : vector<8x256xf32>
    %19 = math.cos %18 : vector<8x256xf32>
    %c0_4 = arith.constant 0 : index
    %c0_5 = arith.constant 0 : index
    %20 = vector.load %arg3[%c0_4, %c0_5] : memref<256x128xf32, #tpu.memory_space<vmem>>, vector<256x128xf32>
    %cst_6 = arith.constant dense<0.000000e+00> : vector<8x128xf32>
    %21 = tpu.matmul %19, %20, %cst_6 {dimension_numbers = #tpu.dot_dimension_numbers<[1], [0], [0], [1], [0, 0, 1, 1], [], []>} : vector<8x256xf32>, vector<256x128xf32>, vector<8x128xf32> -> vector<8x128xf32>
    %c0_7 = arith.constant 0 : index
    %c0_8 = arith.constant 0 : index
    %22 = vector.load %arg4[%c0_7, %c0_8] : memref<1x128xf32, #tpu.memory_space<vmem>>, vector<1x128xf32>
    %23 = vector.broadcast %22 : vector<1x128xf32> to vector<8x128xf32>
    %24 = arith.addf %21, %23 : vector<8x128xf32>
    %25 = arith.negf %24 : vector<8x128xf32>
    %26 = math.exp %25 : vector<8x128xf32>
    %cst_9 = arith.constant 1.000000e+00 : f32
    %27 = vector.broadcast %cst_9 : f32 to vector<8x128xf32>
    %28 = arith.addf %27, %26 : vector<8x128xf32>
    %29 = arith.divf %27, %28 : vector<8x128xf32>
    %30 = arith.mulf %24, %29 : vector<8x128xf32>
    %c0_10 = arith.constant 0 : index
    %c0_11 = arith.constant 0 : index
    %31 = vector.load %arg5[%c0_10, %c0_11] : memref<128x128xf32, #tpu.memory_space<vmem>>, vector<128x128xf32>
    %cst_12 = arith.constant dense<0.000000e+00> : vector<8x128xf32>
    %32 = tpu.matmul %30, %31, %cst_12 {dimension_numbers = #tpu.dot_dimension_numbers<[1], [0], [0], [1], [0, 0, 1, 1], [], []>} : vector<8x128xf32>, vector<128x128xf32>, vector<8x128xf32> -> vector<8x128xf32>
    %c0_13 = arith.constant 0 : index
    %c0_14 = arith.constant 0 : index
    %33 = vector.load %arg6[%c0_13, %c0_14] : memref<1x128xf32, #tpu.memory_space<vmem>>, vector<1x128xf32>
    %34 = vector.broadcast %33 : vector<1x128xf32> to vector<8x128xf32>
    %35 = arith.addf %32, %34 : vector<8x128xf32>
    %c0_15 = arith.constant 0 : index
    %c0_16 = arith.constant 0 : index
    %36 = vector.load %arg7[%c0_15, %c0_16] : memref<8x128xf32, #tpu.memory_space<vmem>>, vector<8x128xf32>
    tpu.vector_store %arg7[%c0_15, %c0_16], %35 {strides = array<i32>} : memref<8x128xf32, #tpu.memory_space<vmem>>, vector<8x128xf32>,
    return
  }
  func.func @transform_0(%arg0: i32, %arg1: i32) -> (i32, i32) {
    %c0_i32 = arith.constant 0 : i32
    %c0_i32_0 = arith.constant 0 : i32
    return %arg0, %c0_i32 : i32, i32
  }
  func.func @transform_1(%arg0: i32, %arg1: i32) -> (i32, i32) {
    %c0_i32 = arith.constant 0 : i32
    %c0_i32_0 = arith.constant 0 : i32
    %c0_i32_1 = arith.constant 0 : i32
    return %c0_i32, %c0_i32_0 : i32, i32
  }
  func.func @transform_2(%arg0: i32, %arg1: i32) -> (i32, i32) {
    %c0_i32 = arith.constant 0 : i32
    %c0_i32_0 = arith.constant 0 : i32
    %c0_i32_1 = arith.constant 0 : i32
    return %c0_i32, %c0_i32_0 : i32, i32
  }
  func.func @transform_3(%arg0: i32, %arg1: i32) -> (i32, i32) {
    %c0_i32 = arith.constant 0 : i32
    %c0_i32_0 = arith.constant 0 : i32
    return %c0_i32, %arg1 : i32, i32
  }
  func.func @transform_4(%arg0: i32, %arg1: i32) -> (i32, i32) {
    %c0_i32 = arith.constant 0 : i32
    %c0_i32_0 = arith.constant 0 : i32
    return %c0_i32, %arg1 : i32, i32
  }
  func.func @transform_5(%arg0: i32, %arg1: i32) -> (i32, i32) {
    %c0_i32 = arith.constant 0 : i32
    return %arg0, %arg1 : i32, i32
  }
}

</mosaic_0001>

<bundles_post_ra>
// kernel: tpu_custom_call.1
= control target key start
LH: loop header
LB: loop body
LE: loop exit
PB: predicated region body
PF: predicated region fallthrough
CT: control target
= control target key end

     0   :  { %10 = vsyncpa [#allocation3], 0  ;;  %s950_s0 = inlined_call_operand.vmem [shape: f32[8,1], index: 0, kind: input, shape index: {}]   ;;  %s951_s1 = inlined_call_operand.hbm [shape: f32[256,128], index: 1, kind: input, shape index: {}]   ;;  %s952_s2 = inlined_call_operand.vmem [shape: f32[1,128], index: 2, kind: input, shape index: {}]   ;;  %s953_s3 = inlined_call_operand.hbm [shape: f32[128,128], index: 3, kind: input, shape index: {}]   ;;  %s954_s4 = inlined_call_operand.vmem [shape: f32[1,128], index: 4, kind: input, shape index: {}]   ;;  %s955_s5 = inlined_call_operand.hbm [shape: f32[8,128], index: 5, kind: output, shape index: {}]  }
   0x1   :  { %11 = vsyncpa [#allocation6], 0 }
   0x2   :  { %12 = vsyncpa [#allocation4], 0  ;;  %s775_s18 = smov [#allocation2]   ;;  %s703_s22 = scalar_lea.hbm %s951_s1, 4096 }
   0x3   :  { %s20_s19 = sshll.u32 %s775_s18, 4  ;;  %p704_p0 = scmp.ne.s32.totalorder %s951_s1, %s703_s22  ;;  %s21_s19 = int_to_ptr.vmem [resolvable:$true] %s20_s19 }
   0x4   :  { %p707_p1 = scmp.lt.u32.totalorder %s703_s22, %s951_s1 }
   0x6   :  { %p709_p2 = pnand %p707_p1, %p704_p0 }
   0x8   :  { %712 = shalt.err (!%p709_p2)
}
   0x9   :  { %s713_s27 = scalar_lea.vmem %s21_s19, 4096  ;;  %p718_p4 = scmp.lt.s32.totalorder %s21_s19, %s21_s19 }
   0xa   :  { %p714_p3 = scmp.ne.s32.totalorder %s21_s19, %s713_s27  ;;  %p719_p5 = scmp.lt.s32.totalorder %s713_s27, %s713_s27 }
   0xc   :  { %p720_p6 = por %p719_p5, %p718_p4 }
   0xe   :  { %p721_p7 = pnand %p720_p6, %p714_p3 }
  0x10   :  { %724 = shalt.err (!%p721_p7)
}
  0x11   :  { %s776_s28 = smov 128   ;;  %s777_s29 = smov 8  }
  0x12   :  { %26 = dma.hbm_to_vmem [thread:$0]  %s951_s1, 4096, %s21_s19, [#allocation3], %s776_s28, %s776_s28, %s777_s29  }
  0x13   :  { %s778_s7 = smov [#allocation5]   ;;  %s725_s11 = scalar_lea.hbm %s953_s3, 2048 }
  0x14   :  { %s34_s8 = sshll.u32 %s778_s7, 4  ;;  %p726_p8 = scmp.ne.s32.totalorder %s953_s3, %s725_s11  ;;  %s35_s8 = int_to_ptr.vmem [resolvable:$true] %s34_s8 }
  0x15   :  { %p729_p9 = scmp.lt.u32.totalorder %s725_s11, %s953_s3 }
  0x17   :  { %p731_p10 = pnand %p729_p9, %p726_p8 }
  0x19   :  { %734 = shalt.err (!%p731_p10)
}
  0x1a   :  { %s735_s16 = scalar_lea.vmem %s35_s8, 2048  ;;  %p740_p12 = scmp.lt.s32.totalorder %s35_s8, %s35_s8 }
  0x1b   :  { %p736_p11 = scmp.ne.s32.totalorder %s35_s8, %s735_s16  ;;  %p741_p13 = scmp.lt.s32.totalorder %s735_s16, %s735_s16 }
  0x1d   :  { %p742_p0 = por %p741_p13, %p740_p12 }
  0x1f   :  { %p743_p1 = pnand %p742_p0, %p736_p11 }
  0x21   :  { %746 = shalt.err (!%p743_p1)
}
  0x22   :  { %40 = dma.hbm_to_vmem [thread:$0]  %s953_s3, 2048, %s35_s8, [#allocation6], %s776_s28, %s776_s28, %s777_s29  }
  0x23   :  { %769 = dma.done.wait [#allocation3], 4096  }
  0x24   :  { %770 = vsyncadd [#allocation3], 4294963200 }
  0x25   :  { %771 = dma.done.wait [#allocation6], 2048  }
  0x26   :  { %772 = vsyncadd [#allocation6], 4294965248  ;;  %v779_v0 = vmov 0   ;;  %v49_v1 = vld [vmem:[%s950_s0] sm:$0xff]  ;;  %v300_v3 = vld [vmem:[#allocation2 + $0x88] sm:$0xff]  ;;  %v50_v50 = vlaneseq  ;;  %s789_s22 = smov [#allocation7]  }
  0x27   :  { %688 = vset.pattern.permute.xlu0 %v779_v0  ;;  %v299_v2 = vld [vmem:[#allocation2 + $0x80] sm:$0xff]  ;;  %v284_v6 = vld [vmem:[#allocation2 + $0x8] sm:$0xff]  ;;  %v301_v7 = vld [vmem:[#allocation2 + $0x90] sm:$0xff]  ;;  %s499_s23 = sshll.u32 %s789_s22, 4  ;;  %s500_s23 = int_to_ptr.vmem [resolvable:$true] %s499_s23 }
  0x28   :  { %70 = vperm.xlu0 %688, %v49_v1   ;;  %v283_v4 = vld [vmem:[#allocation2] sm:$0xff]  ;;  %v609_v5 = vpack.c.bf16 %v300_v3, %v299_v2  ;;  %v302_v8 = vld [vmem:[#allocation2 + $0x98] sm:$0xff]  ;;  %v285_v11 = vld [vmem:[#allocation2 + $0x10] sm:$0xff]  ;;  %v51_v51 = vand.u32 127, %v50_v50  ;;  %p752_p3 = scmp.lt.s32.totalorder %s500_s23, %s500_s23 }
  0x29   :  { %v611_v9 = vpack.c.bf16 %v284_v6, %v283_v4  ;;  %v613_v10 = vpack.c.bf16 %v302_v8, %v301_v7  ;;  %v286_v12 = vld [vmem:[#allocation2 + $0x18] sm:$0xff]  ;;  %v303_v13 = vld [vmem:[#allocation2 + $0xa0] sm:$0xff]  ;;  %v304_v14 = vld [vmem:[#allocation2 + $0xa8] sm:$0xff] }
  0x2a   :  { %610 = vmatprep.subr.bf16.mxu0 %v609_v5  ;;  %v615_v15 = vpack.c.bf16 %v286_v12, %v285_v11  ;;  %v617_v16 = vpack.c.bf16 %v304_v14, %v303_v13  ;;  %v287_v17 = vld [vmem:[#allocation2 + $0x20] sm:$0xff]  ;;  %v288_v18 = vld [vmem:[#allocation2 + $0x28] sm:$0xff]  ;;  %v305_v19 = vld [vmem:[#allocation2 + $0xb0] sm:$0xff]  ;;  %v58_v52 = vcvt.s32.f32 %v51_v51 }
  0x2b   :  { %612 = vmatpush3.bf16.msra.mxu0 %v611_v9  ;;  %v306_v20 = vld [vmem:[#allocation2 + $0xb8] sm:$0xff]  ;;  %v619_v21 = vpack.c.bf16 %v288_v18, %v287_v17  ;;  %v289_v23 = vld [vmem:[#allocation2 + $0x30] sm:$0xff]  ;;  %v307_v25 = vld [vmem:[#allocation2 + $0xc0] sm:$0xff]  ;;  %v780_v17 = vmov 683565275  }
  0x2c   :  { %614 = vmatprep.subr.bf16.mxu0 %v613_v10  ;;  %v621_v22 = vpack.c.bf16 %v306_v20, %v305_v19  ;;  %v290_v24 = vld [vmem:[#allocation2 + $0x38] sm:$0xff]  ;;  %v308_v26 = vld [vmem:[#allocation2 + $0xc8] sm:$0xff]  ;;  %v291_v29 = vld [vmem:[#allocation2 + $0x40] sm:$0xff]  ;;  %v60_v53 = vmul.f32 -0.071955785, %v58_v52 }
  0x2d   :  { %v623_v27 = vpack.c.bf16 %v290_v24, %v289_v23  ;;  %v625_v28 = vpack.c.bf16 %v308_v26, %v307_v25  ;;  %v292_v30 = vld [vmem:[#allocation2 + $0x48] sm:$0xff]  ;;  %v309_v31 = vld [vmem:[#allocation2 + $0xd0] sm:$0xff]  ;;  %v310_v32 = vld [vmem:[#allocation2 + $0xd8] sm:$0xff]  ;;  %v781_v19 = vmov 2475754826  }
  0x2e   :  { %v627_v33 = vpack.c.bf16 %v292_v30, %v291_v29  ;;  %v629_v34 = vpack.c.bf16 %v310_v32, %v309_v31  ;;  %v293_v35 = vld [vmem:[#allocation2 + $0x50] sm:$0xff]  ;;  %v294_v36 = vld [vmem:[#allocation2 + $0x58] sm:$0xff]  ;;  %v311_v37 = vld [vmem:[#allocation2 + $0xe0] sm:$0xff]  ;;  %v62_v54 = vmul.f32 1.442695, %v60_v53 }
  0x2f   :  { %616 = vmatpush3.bf16.msra.mxu0 %v615_v15  ;;  %v312_v38 = vld [vmem:[#allocation2 + $0xe8] sm:$0xff]  ;;  %v631_v39 = vpack.c.bf16 %v294_v36, %v293_v35  ;;  %v295_v41 = vld [vmem:[#allocation2 + $0x60] sm:$0xff]  ;;  %v313_v43 = vld [vmem:[#allocation2 + $0xf0] sm:$0xff]  ;;  %v782_v23 = vmov 2131351028  }
  0x30   :  { %618 = vmatprep.subr.bf16.mxu0 %v617_v16  ;;  %v633_v40 = vpack.c.bf16 %v312_v38, %v311_v37  ;;  %v296_v42 = vld [vmem:[#allocation2 + $0x68] sm:$0xff]  ;;  %v314_v44 = vld [vmem:[#allocation2 + $0xf8] sm:$0xff]  ;;  %v297_v47 = vld [vmem:[#allocation2 + $0x70] sm:$0xff]  ;;  %689 = vpow2.f32 %v62_v54  ;;  %v783_v25 = vmov 2102212464  }
  0x31   :  { %v635_v45 = vpack.c.bf16 %v296_v42, %v295_v41  ;;  %v637_v46 = vpack.c.bf16 %v314_v44, %v313_v43  ;;  %v298_v48 = vld [vmem:[#allocation2 + $0x78] sm:$0xff]  ;;  %v784_v30 = vmov 920167782   ;;  %v785_v37 = vmov 1326507024  }
  0x32   :  { %v639_v49 = vpack.c.bf16 %v298_v48, %v297_v47 }
  0x33   :  { %620 = vmatpush3.bf16.msra.mxu0 %v619_v21 }
  0x34   :  { %622 = vmatprep.subr.bf16.mxu0 %v621_v22 }
  0x37   :  { %624 = vmatpush3.bf16.msra.mxu0 %v623_v27 }
  0x38   :  { %626 = vmatprep.subr.bf16.mxu0 %v625_v28 }
  0x3a   :  { %v690_v55 = vpop.eup %689 }
  0x3b   :  { %628 = vmatpush3.bf16.msra.mxu0 %v627_v33 }
  0x3c   :  { %630 = vmatprep.subr.bf16.mxu0 %v629_v34 }
  0x3f   :  { %632 = vmatpush3.bf16.msra.mxu0 %v631_v39 }
  0x40   :  { %634 = vmatprep.subr.bf16.mxu0 %v633_v40 }
  0x43   :  { %636 = vmatpush3.bf16.msra.mxu0 %v635_v45 }
  0x44   :  { %638 = vmatprep.subr.bf16.mxu0 %v637_v46 }
  0x47   :  { %640 = vmatpush3.bf16.msra.mxu0 %v639_v49 }
  0xa7   :  { %v71_v56 = vpop.permute.xlu0 %70 }
  0xa8   :  { %v847_v57 = vmul.f32 %v690_v55, %v71_v56 }
  0xaa   :  { %v80_v58 = vand.u32 2139095040, %v847_v57  ;;  %v851_v59 = vadd.f32 -1.5707964, %v847_v57  ;;  %v77_v2 = vand.u32 2147483647, %v847_v57 }
  0xac   :  { %v81_v60 = vshrl.u32 %v80_v58, 23  ;;  %v180_v61 = vand.u32 2147483647, %v851_v59  ;;  %v183_v62 = vand.u32 2139095040, %v851_v59  ;;  %v860_v7 = vand.u32 8388607, %v77_v2 }
  0xad   :  { %vm182_vm14 = vcmp.lt.s32.totalorder %v851_v59, 0 }
  0xae   :  { %v511_v63 = vadd.s32 4294967169, %v81_v60  ;;  %v184_v0 = vshrl.u32 %v183_v62, 23  ;;  %v187_v1 = vand.u32 8388607, %v180_v61  ;;  %v85_v14 = vor.u32 8388608, %v860_v7 }
  0xaf   :  { %vm909_vm15 = vcmp.le.f32.partialorder %v180_v61, 0.7853982 }
  0xb0   :  { %v87_v3 = vadd.s32 1, %v511_v63  ;;  %v515_v4 = vadd.s32 4294967169, %v184_v0  ;;  %v188_v5 = vor.u32 8388608, %v187_v1 }
  0xb2   :  { %vm88_vm0 = vcmp.gt.s32.totalorder %v87_v3, 0  ;;  %v190_v6 = vadd.s32 1, %v515_v4  ;;  %v862_v13 = vshll.u32 %v188_v5, 8 }
  0xb3   :  { %v89_v8 = vsel %vm88_vm0, %v87_v3, 0  ;;  %vm79_vm0 = vcmp.lt.s32.totalorder %v847_v57, 0 }
  0xb4   :  { %v91_v9 = vand.u32 31, %v89_v8  ;;  %vm191_vm1 = vcmp.gt.s32.totalorder %v190_v6, 0  ;;  %v865_v15 = vshrl.u32 %v89_v8, 5 }
  0xb5   :  { %v192_v10 = vsel %vm191_vm1, %v190_v6, 0  ;;  %vm921_vm1 = vcmp.le.f32.partialorder %v77_v2, 0.7853982 }
  0xb6   :  { %v193_v11 = vshrl.u32 %v192_v10, 5  ;;  %v194_v12 = vand.u32 31, %v192_v10  ;;  %v92_v16 = vsub.s32 32, %v91_v9  ;;  %v94_v18 = vshll.u32 %v780_v17, %v91_v9 }
  0xb7   :  { %v97_v20 = vshll.u32 %v781_v19, %v91_v9  ;;  %v100_v24 = vshll.u32 %v782_v23, %v91_v9  ;;  %v103_v26 = vshll.u32 %v783_v25, %v91_v9  ;;  %v106_v7 = vshll.u32 %v784_v30, %v91_v9 }
  0xb8   :  { %v195_v21 = vsub.s32 32, %v194_v12  ;;  %v197_v22 = vshll.u32 %v780_v17, %v194_v12  ;;  %v200_v27 = vshll.u32 %v781_v19, %v194_v12  ;;  %v203_v28 = vshll.u32 %v782_v23, %v194_v12 }
  0xb9   :  { %v206_v29 = vshll.u32 %v783_v25, %v194_v12  ;;  %v209_v31 = vshll.u32 %v784_v30, %v194_v12  ;;  %vm212_vm2 = vcmp.lt.s32.totalorder %v193_v11, 1  ;;  %vm214_vm3 = vcmp.lt.s32.totalorder %v193_v11, 3 }
  0xba   :  { %v198_v32 = vshrl.u32 %v781_v19, %v195_v21  ;;  %v201_v33 = vshrl.u32 %v782_v23, %v195_v21  ;;  %v204_v34 = vshrl.u32 %v783_v25, %v195_v21  ;;  %v196_v35 = vshrl.u32 %v780_v17, %v195_v21 }
  0xbb   :  { %v207_v36 = vshrl.u32 %v784_v30, %v195_v21  ;;  %v210_v38 = vshrl.u32 %v785_v37, %v195_v21  ;;  %vm215_vm4 = vcmp.lt.s32.totalorder %v193_v11, 4  ;;  %v95_v44 = vshrl.u32 %v781_v19, %v92_v16 }
  0xbc   :  { %v199_v39 = vor.u32 %v198_v32, %v197_v22  ;;  %v202_v40 = vor.u32 %v201_v33, %v200_v27  ;;  %v205_v41 = vor.u32 %v204_v34, %v203_v28  ;;  %v98_v45 = vshrl.u32 %v782_v23, %v92_v16 }
  0xbd   :  { %v208_v42 = vor.u32 %v207_v36, %v206_v29  ;;  %v211_v43 = vor.u32 %v210_v38, %v209_v31  ;;  %vm213_vm5 = vcmp.lt.s32.totalorder %v193_v11, 2  ;;  %v96_v56 = vor.u32 %v95_v44, %v94_v18 }
  0xbe   :  { %v216_v46 = vsel %vm212_vm2, %v196_v35, %v199_v39  ;;  %v217_v47 = vsel %vm215_vm4, %v205_v41, 2102212464  ;;  %v220_v48 = vsel %vm212_vm2, %v199_v39, %v202_v40  ;;  %v224_v49 = vsel %vm212_vm2, %v202_v40, %v205_v41 }
  0xbf   :  { %v218_v50 = vsel %vm214_vm3, %v202_v40, %v217_v47  ;;  %v221_v51 = vsel %vm215_vm4, %v208_v42, 920167782  ;;  %v225_v52 = vsel %vm215_vm4, %v211_v43, 1326507024  ;;  %v99_v62 = vor.u32 %v98_v45, %v97_v20 }
  0xc0   :  { %v219_v53 = vsel %vm213_vm5, %v216_v46, %v218_v50  ;;  %v222_v54 = vsel %vm214_vm3, %v205_v41, %v221_v51  ;;  %v226_v55 = vsel %vm214_vm3, %v208_v42, %v225_v52  ;;  %v101_v63 = vshrl.u32 %v783_v25, %v92_v16 }
  0xc1   :  { %v223_v58 = vsel %vm213_vm5, %v220_v48, %v222_v54  ;;  %v227_v60 = vsel %vm213_vm5, %v224_v49, %v226_v55  ;;  %v104_v6 = vshrl.u32 %v784_v30, %v92_v16  ;;  %v107_v8 = vshrl.u32 %v785_v37, %v92_v16 }
  0xc2   :  { %v874_v0 = vmul.u32.u64.low %v862_v13, %v227_v60  ;;  %v875_v1 = vmul.u32.u64.high %v862_v13, %v227_v60, %v874_v0  ;;  %v878_v3 = vmul.u32.u64.low %v862_v13, %v223_v58  ;;  %v879_v4 = vmul.u32.u64.high %v862_v13, %v223_v58, %v878_v3 }
  0xc3   :  { %v102_v5 = vor.u32 %v101_v63, %v100_v24  ;;  %v235_v10 = vmul.u32 %v862_v13, %v219_v53  ;;  %v93_v11 = vshrl.u32 %v780_v17, %v92_v16  ;;  %vm109_vm6 = vcmp.lt.s32.totalorder %v865_v15, 1 }
  0xc4   :  { %v125_v12 = vshll.u32 %v85_v14, 8  ;;  %v105_v18 = vor.u32 %v104_v6, %v103_v26  ;;  %v108_v19 = vor.u32 %v107_v8, %v106_v7  ;;  %vm110_vm7 = vcmp.lt.s32.totalorder %v865_v15, 2 }
  0xc5   :  { %vm112_vm8 = vcmp.lt.s32.totalorder %v865_v15, 4  ;;  %vm237_vm9 = vc.u32 %v875_v1, %v878_v3  ;;  %v238_v20 = vadd.s32 1, %v879_v4  ;;  %v117_v22 = vsel %vm109_vm6, %v96_v56, %v99_v62 }
  0xc6   :  { %v114_v21 = vsel %vm112_vm8, %v102_v5, 2102212464  ;;  %vm111_vm10 = vcmp.lt.s32.totalorder %v865_v15, 3  ;;  %v118_v9 = vsel %vm112_vm8, %v105_v18, 920167782  ;;  %v121_v13 = vsel %vm109_vm6, %v99_v62, %v102_v5 }
  0xc7   :  { %v122_v16 = vsel %vm112_vm8, %v108_v19, 1326507024  ;;  %v239_v17 = vsel %vm237_vm9, %v238_v20, %v879_v4  ;;  %v113_v14 = vsel %vm109_vm6, %v93_v11, %v96_v56  ;;  %v119_v23 = vsel %vm111_vm10, %v102_v5, %v118_v9 }
  0xc8   :  { %v123_v24 = vsel %vm111_vm10, %v105_v18, %v122_v16  ;;  %v240_v25 = vadd.s32 %v239_v17, %v235_v10  ;;  %v115_v26 = vsel %vm111_vm10, %v99_v62, %v114_v21  ;;  %v120_v27 = vsel %vm110_vm7, %v117_v22, %v119_v23 }
  0xc9   :  { %v124_v28 = vsel %vm110_vm7, %v121_v13, %v123_v24  ;;  %v896_v31 = vmul.u32.u64.low %v125_v12, %v120_v27  ;;  %v897_v32 = vmul.u32.u64.high %v125_v12, %v120_v27, %v896_v31  ;;  %v116_v34 = vsel %vm110_vm7, %v113_v14, %v115_v26 }
  0xca   :  { %v893_v29 = vmul.u32.u64.low %v125_v12, %v124_v28  ;;  %v894_v30 = vmul.u32.u64.high %v125_v12, %v124_v28, %v893_v29  ;;  %v241_v33 = vadd.s32 536870912, %v240_v25  ;;  %v132_v38 = vmul.u32 %v125_v12, %v116_v34 }
  0xcb   :  { %v135_v36 = vadd.s32 1, %v897_v32  ;;  %v236_v51 = vadd.s32 %v878_v3, %v875_v1  ;;  %vm272_vm5 = vweird.f32 %v851_v59  ;;  %vm169_vm9 = vweird.f32 %v847_v57 }
  0xcc   :  { %v242_v35 = vshrl.u32 %v241_v33, 30  ;;  %vm134_vm11 = vc.u32 %v894_v30, %v896_v31  ;;  %v133_v8 = vadd.s32 %v896_v31, %v894_v30  ;;  %vm787_vm10 = vmmov 0  }
  0xcd   :  { %v136_v39 = vsel %vm134_vm11, %v135_v36, %v897_v32 }
  0xce   :  { %v243_v37 = vshll.u32 %v242_v35, 30  ;;  %v137_v41 = vadd.s32 %v136_v39, %v132_v38  ;;  %v266_v13 = vsub.s32 4, %v242_v35 }
  0xd0   :  { %v244_v40 = vsub.s32 %v240_v25, %v243_v37  ;;  %v138_v43 = vadd.s32 536870912, %v137_v41  ;;  %v267_v24 = vsel %vm182_vm14, %v266_v13, %v242_v35 }
  0xd1   :  { %v269_v26 = vsel %vm909_vm15, 0, %v267_v24  ;;  %v521_v24 = vld [vmem:[%s954_s4] ss:$0 sm:$0xff] }
  0xd2   :  { %v246_v42 = vsub.s32 0, %v244_v40  ;;  %v139_v45 = vshrl.u32 %v138_v43, 30  ;;  %v273_v30 = vand.u32 3, %v269_v26 }
  0xd4   :  { %v516_v44 = vmin.u32 %v246_v42, %v244_v40  ;;  %v140_v47 = vshll.u32 %v139_v45, 30  ;;  %v163_v29 = vsub.s32 4, %v139_v45  ;;  %vm278_vm2 = vcmp.eq.s32.totalorder %v273_v30, 2 }
  0xd5   :  { %vm275_vm3 = vcmp.eq.s32.totalorder %v273_v30, 0  ;;  %vm274_vm4 = vcmp.lt.s32.totalorder %v273_v30, 2 }
  0xd6   :  { %v248_v46 = vclz %v516_v44  ;;  %v141_v15 = vsub.s32 %v137_v41, %v140_v47  ;;  %v164_v35 = vsel %vm79_vm0, %v163_v29, %v139_v45 }
  0xd7   :  { %v166_v38 = vsel %vm921_vm1, 0, %v164_v35 }
  0xd8   :  { %v517_v48 = vadd.s32 4294967294, %v248_v46  ;;  %v143_v50 = vsub.s32 0, %v141_v15  ;;  %v170_v41 = vand.u32 3, %v166_v38 }
  0xda   :  { %vm518_vm12 = vcmp.lt.s32.totalorder %v517_v48, 0  ;;  %v512_v54 = vmin.u32 %v143_v50, %v141_v15  ;;  %vm175_vm6 = vcmp.eq.s32.totalorder %v170_v41, 2  ;;  %vm172_vm7 = vcmp.eq.s32.totalorder %v170_v41, 0 }
  0xdb   :  { %v251_v49 = vsel %vm518_vm12, 0, %v517_v48  ;;  %vm171_vm8 = vcmp.lt.s32.totalorder %v170_v41, 2 }
  0xdc   :  { %v252_v52 = vsub.s32 32, %v251_v49  ;;  %v256_v53 = vsub.s32 4294967266, %v251_v49  ;;  %v253_v55 = vshll.u32 %v244_v40, %v251_v49  ;;  %v145_v60 = vclz %v512_v54  ;;  %v399_v49 = vld [vmem:[#allocation5] sm:$0xff] }
  0xde   :  { %v254_v56 = vshrl.u32 %v236_v51, %v252_v52  ;;  %v257_v58 = vadd.s32 127, %v256_v53  ;;  %v513_v0 = vadd.s32 4294967294, %v145_v60  ;;  %v786_v51 = vmov 0.0|0.0   ;;  %v401_v52 = vld [vmem:[#allocation5 + $0x10] sm:$0xff]  ;;  %v402_v53 = vld [vmem:[#allocation5 + $0x18] sm:$0xff] }
  0xdf   :  { %641 = vmatprep.subr.bf16.mxu1 %v786_v51  ;;  %v645_v54 = vpack.c.bf16 %v402_v53, %v401_v52  ;;  %v406_v60 = vld [vmem:[#allocation5 + $0x38] sm:$0xff] }
  0xe0   :  { %v255_v62 = vor.u32 %v254_v56, %v253_v55  ;;  %v258_v63 = vshll.u32 %v257_v58, 23  ;;  %vm514_vm13 = vcmp.lt.s32.totalorder %v513_v0, 0  ;;  %v403_v55 = vld [vmem:[#allocation5 + $0x20] sm:$0xff]  ;;  %v404_v56 = vld [vmem:[#allocation5 + $0x28] sm:$0xff] }
  0xe1   :  { %v148_v7 = vsel %vm514_vm13, 0, %v513_v0  ;;  %v648_v58 = vpack.c.bf16 %v404_v56, %v403_v55  ;;  %v408_v0 = vld [vmem:[#allocation5 + $0x48] sm:$0xff] }
  0xe2   :  { %v259_v4 = vor.u32 4788187, %v258_v63  ;;  %v262_v6 = vcvt.s32.f32 %v255_v62  ;;  %v149_v10 = vsub.s32 32, %v148_v7  ;;  %v153_v11 = vsub.s32 4294967266, %v148_v7  ;;  %v407_v63 = vld [vmem:[#allocation5 + $0x40] sm:$0xff] }
  0xe3   :  { %v150_v3 = vshll.u32 %v141_v15, %v148_v7  ;;  %v788_v7 = vmov 0.0  }
  0xe4   :  { %v260_v5 = vand.u32 2147483647, %v259_v4  ;;  %v151_v12 = vshrl.u32 %v133_v8, %v149_v10  ;;  %v154_v18 = vadd.s32 127, %v153_v11  ;;  %v654_v4 = vpack.c.bf16 %v408_v0, %v407_v63  ;;  %606 = vmatprep.mubr.msk.f32.mxu1 %vm787_vm10, %v788_v7  ;;  %v411_v10 = vld [vmem:[#allocation5 + $0x60] sm:$0xff]  ;;  %v412_v11 = vld [vmem:[#allocation5 + $0x68] sm:$0xff] }
  0xe6   :  { %v263_v1 = vmul.f32 %v262_v6, %v260_v5  ;;  %v152_v20 = vor.u32 %v151_v12, %v150_v3  ;;  %v155_v21 = vshll.u32 %v154_v18, 23  ;;  %v409_v5 = vld [vmem:[#allocation5 + $0x50] sm:$0xff]  ;;  %v410_v6 = vld [vmem:[#allocation5 + $0x58] sm:$0xff] }
  0xe7   :  { %v657_v8 = vpack.c.bf16 %v410_v6, %v409_v5  ;;  %v413_v3 = vld [vmem:[#allocation5 + $0x70] sm:$0xff]  ;;  %v414_v12 = vld [vmem:[#allocation5 + $0x78] sm:$0xff] }
  0xe8   :  { %v264_v19 = vxor.u32 2147483648, %v263_v1  ;;  %v156_v17 = vor.u32 4788187, %v155_v21  ;;  %v159_v23 = vcvt.s32.f32 %v152_v20  ;;  %v663_v18 = vpack.c.bf16 %v414_v12, %v413_v3  ;;  %v519_v20 = vld [vmem:[%s952_s2] ss:$0 sm:$0xff]  ;;  %s747_s2 = scalar_lea.vmem %s500_s23, 128 }
  0xe9   :  { %p748_p2 = scmp.ne.s32.totalorder %s500_s23, %s747_s2  ;;  %p753_p4 = scmp.lt.s32.totalorder %s747_s2, %s747_s2 }
  0xea   :  { %v265_v9 = vsel %vm182_vm14, %v264_v19, %v263_v1  ;;  %v157_v14 = vand.u32 2147483647, %v156_v17  ;;  %v660_v1 = vpack.c.bf16 %v412_v11, %v411_v10 }
  0xeb   :  { %v268_v16 = vsel %vm909_vm15, %v851_v59, %v265_v9  ;;  %v400_v59 = vld [vmem:[#allocation5 + $0x8] sm:$0xff]  ;;  %p754_p5 = por %p753_p4, %p752_p3 }
  0xec   :  { %691 = vcosq.f32 %v268_v16  ;;  %v160_v25 = vmul.f32 %v159_v23, %v157_v14  ;;  %v642_v50 = vpack.c.bf16 %v400_v59, %v399_v49 }
  0xed   :  { %693 = vsinq.f32 %v268_v16  ;;  %p755_p6 = pnand %p754_p5, %p748_p2 }
  0xee   :  { %v161_v61 = vxor.u32 2147483648, %v160_v25  ;;  %643 = vmatpush3.bf16.msra.mxu1 %v642_v50 }
  0xef   :  { %644 = vmatprep.subr.bf16.mxu1 %v786_v51 }
  0xf0   :  { %v162_v28 = vsel %vm79_vm0, %v161_v61, %v160_v25 }
  0xf1   :  { %v165_v31 = vsel %vm921_vm1, %v847_v57, %v162_v28  ;;  %v405_v57 = vld [vmem:[#allocation5 + $0x30] sm:$0xff] }
  0xf2   :  { %695 = vcosq.f32 %v165_v31  ;;  %646 = vmatpush3.bf16.msra.mxu1 %v645_v54  ;;  %v651_v62 = vpack.c.bf16 %v406_v60, %v405_v57 }
  0xf3   :  { %697 = vsinq.f32 %v165_v31  ;;  %647 = vmatprep.subr.bf16.mxu1 %v786_v51 }
  0xf6   :  { %v692_v32 = vpop.eup %691  ;;  %649 = vmatpush3.bf16.msra.mxu1 %v648_v58 }
  0xf7   :  { %v694_v33 = vpop.eup %693  ;;  %v279_v34 = vxor.u32 2147483648, %v692_v32  ;;  %650 = vmatprep.subr.bf16.mxu1 %v786_v51 }
  0xf8   :  { %v276_v36 = vxor.u32 2147483648, %v694_v33 }
  0xf9   :  { %v280_v2 = vsel %vm278_vm2, %v279_v34, %v694_v33 }
  0xfa   :  { %v277_v37 = vsel %vm275_vm3, %v692_v32, %v276_v36  ;;  %652 = vmatpush3.bf16.msra.mxu1 %v651_v62 }
  0xfb   :  { %v281_v39 = vsel %vm274_vm4, %v277_v37, %v280_v2  ;;  %653 = vmatprep.subr.bf16.mxu1 %v786_v51 }
  0xfc   :  { %v282_v40 = vsel %vm272_vm5, nan, %v281_v39  ;;  %v696_v42 = vpop.eup %695 }
  0xfd   :  { %386 = vmatprep.mubr.f32.mxu0 %v282_v40  ;;  %v698_v43 = vpop.eup %697  ;;  %v176_v44 = vxor.u32 2147483648, %v696_v42 }
  0xfe   :  { %v173_v46 = vxor.u32 2147483648, %v698_v43  ;;  %655 = vmatpush3.bf16.msra.mxu1 %v654_v4 }
  0xff   :  { %v177_v45 = vsel %vm175_vm6, %v176_v44, %v698_v43  ;;  %656 = vmatprep.subr.bf16.mxu1 %v786_v51 }
 0x100   :  { %v174_v47 = vsel %vm172_vm7, %v696_v42, %v173_v46 }
 0x101   :  { %v178_v48 = vsel %vm171_vm8, %v174_v47, %v177_v45 }
 0x102   :  { %v179_v15 = vsel %vm169_vm9, nan, %v178_v48  ;;  %658 = vmatpush3.bf16.msra.mxu1 %v657_v8 }
 0x103   :  { %387 = vmatmul.mubr.f32.vlgmr.msra.gmra.mrb[0].mxu0 %v179_v15  ;;  %659 = vmatprep.subr.bf16.mxu1 %v786_v51 }
 0x106   :  { %661 = vmatpush3.bf16.msra.mxu1 %v660_v1 }
 0x107   :  { %662 = vmatprep.subr.bf16.mxu1 %v786_v51 }
 0x10a   :  { %664 = vmatpush3.bf16.msra.mxu1 %v663_v18 }
 0x1d6   :  { %v554_v19 = vpop.f32.mrb[0].mxu0 }
 0x1d7   :  { %v555_v21 = vpop.f32.mrb[1].mxu0 }
 0x1d8   :  { %v556_v22 = vadd.f32 %v555_v21, %v554_v19 }
 0x1da   :  { %v389_v9 = vadd.f32 %v556_v22, %v519_v20 }
 0x1dc   :  { %v520_v13 = vmul.f32 -1.442695, %v389_v9 }
 0x1de   :  { %699 = vpow2.f32 %v520_v13 }
 0x1e8   :  { %v700_v16 = vpop.eup %699 }
 0x1e9   :  { %v395_v17 = vadd.f32 1.0, %v700_v16 }
 0x1eb   :  { %701 = vrcp.f32 %v395_v17 }
 0x1f5   :  { %v702_v14 = vpop.eup %701 }
 0x1f6   :  { %v398_v23 = vmul.f32 %v702_v14, %v389_v9 }
 0x1f8   :  { %607 = vmatmul.mubr.f32.vlgmr.msra.gmra.mrb[0].mxu1 %v398_v23 }
 0x2cb   :  { %v488_v25 = vpop.f32.mrb[0].mxu1 }
 0x2cc   :  { %v489_v26 = vadd.f32 %v521_v24, %v488_v25  ;;  %v608_v61 = vpop.f32.mrb[1].mxu1 }
 0x2ce   :  { %492 = vst [vmem:[#allocation7] sm:$0xff] %v489_v26 }
 0x2cf   :  { %758 = shalt.err (!%p755_p6)
}
 0x2d0   :  { %s759_s26 = scalar_lea.hbm %s955_s5, 128 }
 0x2d1   :  { %p760_p7 = scmp.ne.s32.totalorder %s955_s5, %s759_s26  ;;  %p763_p8 = scmp.lt.u32.totalorder %s759_s26, %s955_s5 }
 0x2d3   :  { %p765_p9 = pnand %p763_p8, %p760_p7 }
 0x2d5   :  { %768 = shalt.err (!%p765_p9)
}
 0x2d6   :  { %502 = dma.vmem_to_hbm [thread:$0]  %s500_s23, 128, %s955_s5, [#allocation4]  }
 0x2d7   :  { %773 = dma.done.wait [#allocation4], 128  }
 0x2d8   :  { %774 = vsyncadd [#allocation4], 4294967168 }
 0x2d9   :  { %506 = vsyncpa [#allocation3], 1 }
 0x2da   :  { %507 = vsyncpa [#allocation6], 1 }
 0x2db   :  { %508 = vsyncpa [#allocation4], 1 }

</bundles_post_ra>
